<compile_context>
chip_gen: v5e
topology: v5e:2x2
jax: 0.10.0
libtpu: 0.0.40
codegen_flags: <defaults>
</compile_context>

<pallas_src>
import functools
import math

import jax
import jax.numpy as jnp
from jax.experimental import pallas as pl
from jax.experimental.pallas import tpu as pltpu


def _rmsnorm_kernel(x_ref, w_ref, o_ref, *, eps: float):
    # x_ref: (tile_rows, hidden) block in VMEM; w_ref: (1, hidden), resident.
    x = x_ref[...]
    xf = x.astype(jnp.float32)
    ms = jnp.mean(xf * xf, axis=-1, keepdims=True)   # f32 mean of squares (VPU + XLU)
    rms = jax.lax.rsqrt(ms + eps)                     # EUP rsqrt
    if o_ref.dtype == jnp.float32:
        o_ref[...] = (w_ref[...].astype(jnp.float32) * (xf * rms)).astype(o_ref.dtype)
    else:
        # Normalize in f32, cast once, then scale in the I/O dtype: keeps the
        # reduction/normalization accurate while avoiding a second full-width
        # f32 temp.
        xn = (xf * rms).astype(x.dtype)
        o_ref[...] = (xn * w_ref[...].astype(x.dtype)).astype(o_ref.dtype)


def _rmsnorm_folded_kernel(x_ref, w_ref, seg_ref, o_ref, *, eps: float, hidden: int):
    # x_ref: (tile_rows, k*hidden): each VMEM row packs k logical rows along the
    # lane dimension (k*hidden is a multiple of 128 -> lane-dense stores).
    # seg_ref: (k*hidden, k*hidden) block-diagonal 0/1 matrix; (xf*xf) @ seg gives
    # every lane the sum of squares of its own hidden-wide segment. HIGHEST
    # precision keeps the f32 sum exact; the MXU is idle in this mem-bound kernel.
    x = x_ref[...]
    xf = x.astype(jnp.float32)
    seg_sums = jnp.dot(xf * xf, seg_ref[...],
                       preferred_element_type=jnp.float32,
                       precision=jax.lax.Precision.HIGHEST)
    rms = jax.lax.rsqrt(seg_sums * (1.0 / hidden) + eps)
    if o_ref.dtype == jnp.float32:
        o_ref[...] = (w_ref[...].astype(jnp.float32) * (xf * rms)).astype(o_ref.dtype)
    else:
        xn = (xf * rms).astype(x.dtype)
        o_ref[...] = (xn * w_ref[...].astype(x.dtype)).astype(o_ref.dtype)


def _round_up(x: int, m: int) -> int:
    return (x + m - 1) // m * m


def _tpu_generation_info():
    """Returns (vmem_capacity_bytes, num_tensorcores, target_block_bytes)."""
    kind = ""
    try:
        kind = jax.devices()[0].device_kind.lower()
    except Exception:
        pass
    is_v7 = "7" in kind  # v5e/v6e/v4/... contain no '7'

    vmem_cap = None
    try:
        info = pltpu.get_tpu_info()
        cap = getattr(info, "vmem_capacity_bytes", None)
        if cap:
            vmem_cap = int(cap)
    except Exception:
        pass
    if not vmem_cap:
        # Fallback by device kind: 128 MiB parts (v5e/v6e) vs 64 MiB/TC (v7x).
        vmem_cap = (64 << 20) if is_v7 else (128 << 20)

    num_cores = 2 if is_v7 else 1
    # Bigger blocks on v7x: each byte is ~2.3x cheaper at 3.2 TB/s but the
    # ~0.35 us per-grid-step cost is unchanged.
    target_block_bytes = (8 << 20) if is_v7 else (4 << 20)
    return vmem_cap, num_cores, target_block_bytes


def _pick_tile_rows(rows: int, width: int, itemsize: int, sub: int,
                    vmem_limit: int, num_cores: int, target_block_bytes: int) -> int:
    row_bytes = width * itemsize
    # Residency: 4 double-buffered I/O blocks, plus ~2 block-equivalents of f32
    # temp only when the input is sub-32-bit (the xf intermediate).
    divisor = 6 if itemsize >= 4 else 7
    per_block_budget = min(vmem_limit // divisor, target_block_bytes)
    per_block_budget = max(per_block_budget, sub * row_bytes)

    tile = max(sub, per_block_budget // max(row_bytes, 1))
    tile = max((tile // sub) * sub, sub)                 # sublane-aligned
    padded_rows = _round_up(rows, sub)
    tile = min(tile, padded_rows)

    # Load balance: >= 2 pipelined steps per TensorCore when affordable
    # (>= 4 steps on v7x so each core double-buffers).
    min_steps = 2 * num_cores
    if pl.cdiv(rows, tile) < min_steps and padded_rows >= min_steps * sub:
        tile = min(padded_rows, max(sub, _round_up(pl.cdiv(rows, min_steps), sub)))

    # Best-effort: make the step count a multiple of num_cores so the masked
    # boundary block does not leave one core idle.
    if num_cores > 1:
        steps = pl.cdiv(rows, tile)
        if steps > num_cores and steps % num_cores != 0:
            target_steps = _round_up(steps, num_cores)
            cand = max(sub, _round_up(pl.cdiv(rows, target_steps), sub))
            if pl.cdiv(rows, cand) % num_cores == 0:
                tile = cand
    return tile


def rmsnorm(x: jax.Array, weight: jax.Array, eps: float = 1e-5) -> jax.Array:
    """RMSNorm over the last axis of x, scaled by `weight` (shape (hidden,))."""
    orig_shape = x.shape
    hidden = orig_shape[-1]
    assert weight.shape == (hidden,)

    x2d = x.reshape(-1, hidden)
    rows = x2d.shape[0]
    itemsize = jnp.dtype(x.dtype).itemsize

    vmem_cap, num_cores, target_block_bytes = _tpu_generation_info()
    # Raise the scoped VMEM limit above the 16/32 MiB defaults, with headroom
    # below physical capacity (96 MiB on 128 MiB parts, 48 MiB on v7x).
    vmem_limit = min(96 << 20, (vmem_cap * 3) // 4)

    # Lane-dense dispatch: if hidden is not a multiple of 128 but small, fold k
    # rows into the lane dimension so stores are full-width (unmasked vst).
    fold = 1
    if hidden % 128 != 0:
        k = 128 // math.gcd(hidden, 128)
        if rows % k == 0 and k * hidden <= 1024:
            fold = k
        # else: fall through to the standard path (correct, masked stores).

    if fold > 1:
        width = fold * hidden
        x_work = x2d.reshape(rows // fold, width)
        w_work = jnp.tile(weight, fold).reshape(1, width)
        seg_idx = jnp.arange(width, dtype=jnp.int32) // hidden
        seg = (seg_idx[:, None] == seg_idx[None, :]).astype(jnp.float32)
        kernel = functools.partial(_rmsnorm_folded_kernel, eps=eps, hidden=hidden)
        extra_inputs = (seg,)
        extra_specs = [pl.BlockSpec((width, width), lambda i: (0, 0))]
    else:
        width = hidden
        x_work = x2d
        w_work = weight.reshape(1, hidden)
        kernel = functools.partial(_rmsnorm_kernel, eps=eps)
        extra_inputs = ()
        extra_specs = []

    work_rows = x_work.shape[0]
    # Packed-sublane multiple: 8 for f32, 16 for bf16, 32 for int8/fp8.
    sub = max(8, 32 // max(itemsize, 1))
    tile_rows = _pick_tile_rows(work_rows, width, itemsize, sub,
                                vmem_limit, num_cores, target_block_bytes)
    grid_steps = pl.cdiv(work_rows, tile_rows)  # boundary block masked by Pallas

    # Very large hidden can force tile_rows down to the sublane minimum; a third
    # input buffer then hides the exposed DMA issue latency (no-op otherwise).
    if tile_rows <= 2 * sub and grid_steps >= 4:
        x_spec = pl.BlockSpec((tile_rows, width), lambda i: (i, 0),
                              pipeline_mode=pl.Buffered(3))
    else:
        x_spec = pl.BlockSpec((tile_rows, width), lambda i: (i, 0))

    in_specs = [x_spec, pl.BlockSpec((1, width), lambda i: (0, 0))] + extra_specs

    cost = pl.CostEstimate(
        flops=3 * rows * hidden,
        transcendentals=rows,
        bytes_accessed=2 * rows * hidden * itemsize + hidden * itemsize,
    )

    out = pl.pallas_call(
        kernel,
        out_shape=jax.ShapeDtypeStruct((work_rows, width), x.dtype),
        grid_spec=pltpu.PrefetchScalarGridSpec(
            num_scalar_prefetch=0,
            grid=(grid_steps,),
            in_specs=in_specs,
            out_specs=pl.BlockSpec((tile_rows, width), lambda i: (i, 0)),
        ),
        compiler_params=pltpu.CompilerParams(
            dimension_semantics=("parallel",),
            vmem_limit_bytes=int(vmem_limit),
        ),
        cost_estimate=cost,
    )(x_work, w_work, *extra_inputs)

    return out.reshape(orig_shape)


if __name__ == "__main__":
    batch, seq, hidden = 2, 16, 32
    eps = 1e-5

    key = jax.random.PRNGKey(0)
    x = jax.random.normal(key, (batch, seq, hidden), dtype=jnp.float32)

    # Deterministic parameter init, same as nn.Parameter(torch.ones(hidden_size)).
    weight = jnp.ones((hidden,), dtype=jnp.float32)

    y = rmsnorm(x, weight, eps=eps)
    jax.block_until_ready(y)

    # Pure-JAX reference check of the forward semantics.
    rms_ref = jax.lax.rsqrt(jnp.mean(x * x, axis=-1, keepdims=True) + eps)
    y_ref = weight * (x * rms_ref)
    assert y.shape == x.shape and y.dtype == x.dtype
    assert jnp.allclose(y, y_ref, atol=1e-5, rtol=1e-5)

    print("KERNEL_OK")
</pallas_src>

<mosaic_0001>
module attributes {stable_mosaic.version = 11 : i64} {
  func.func @_rmsnorm_folded_kernel(%arg0: i32, %arg1: memref<8x128xf32, #tpu.memory_space<vmem>>, %arg2: memref<1x128xf32, #tpu.memory_space<vmem>>, %arg3: memref<128x128xf32, #tpu.memory_space<vmem>>, %arg4: memref<8x128xf32, #tpu.memory_space<vmem>>) attributes {dimension_semantics = [#tpu.dimension_semantics<parallel>], iteration_bounds = array<i64: 1>, scalar_prefetch = 0 : i64, scratch_operands = 0 : i64, tpu.core_type = #tpu.core_type<tc>, window_params = [{transform_indices = @transform_0, window_bounds = array<i64: 8, 128>}, {pipeline_mode = #tpu.pipeline_mode<synchronous>, transform_indices = @transform_1, window_bounds = array<i64: 1, 128>}, {pipeline_mode = #tpu.pipeline_mode<synchronous>, transform_indices = @transform_2, window_bounds = array<i64: 128, 128>}, {transform_indices = @transform_3, window_bounds = array<i64: 8, 128>}]} {
    %c0 = arith.constant 0 : index
    %c0_0 = arith.constant 0 : index
    %0 = vector.load %arg1[%c0, %c0_0] : memref<8x128xf32, #tpu.memory_space<vmem>>, vector<8x128xf32>
    %1 = arith.mulf %0, %0 : vector<8x128xf32>
    %c0_1 = arith.constant 0 : index
    %c0_2 = arith.constant 0 : index
    %2 = vector.load %arg3[%c0_1, %c0_2] : memref<128x128xf32, #tpu.memory_space<vmem>>, vector<128x128xf32>
    %cst = arith.constant dense<0.000000e+00> : vector<8x128xf32>
    %3 = tpu.matmul %1, %2, %cst {dimension_numbers = #tpu.dot_dimension_numbers<[1], [0], [0], [1], [0, 0, 1, 1], [], []>, precision = #tpu.contract_precision<fp32>} : vector<8x128xf32>, vector<128x128xf32>, vector<8x128xf32> -> vector<8x128xf32>
    %cst_3 = arith.constant 3.125000e-02 : f32
    %4 = vector.broadcast %cst_3 : f32 to vector<8x128xf32>
    %5 = arith.mulf %3, %4 : vector<8x128xf32>
    %cst_4 = arith.constant 9.99999974E-6 : f32
    %6 = vector.broadcast %cst_4 : f32 to vector<8x128xf32>
    %7 = arith.addf %5, %6 : vector<8x128xf32>
    %8 = math.rsqrt %7 : vector<8x128xf32>
    %c0_5 = arith.constant 0 : index
    %c0_6 = arith.constant 0 : index
    %9 = vector.load %arg2[%c0_5, %c0_6] : memref<1x128xf32, #tpu.memory_space<vmem>>, vector<1x128xf32>
    %10 = arith.mulf %0, %8 : vector<8x128xf32>
    %11 = vector.broadcast %9 : vector<1x128xf32> to vector<8x128xf32>
    %12 = arith.mulf %11, %10 : vector<8x128xf32>
    %c0_7 = arith.constant 0 : index
    %c0_8 = arith.constant 0 : index
    %13 = vector.load %arg4[%c0_7, %c0_8] : memref<8x128xf32, #tpu.memory_space<vmem>>, vector<8x128xf32>
    tpu.vector_store %arg4[%c0_7, %c0_8], %12 {strides = array<i32>} : memref<8x128xf32, #tpu.memory_space<vmem>>, vector<8x128xf32>,
    return
  }
  func.func @transform_0(%arg0: i32) -> (i32, i32) {
    %c0_i32 = arith.constant 0 : i32
    %c0_i32_0 = arith.constant 0 : i32
    return %arg0, %c0_i32 : i32, i32
  }
  func.func @transform_1(%arg0: i32) -> (i32, i32) {
    %c0_i32 = arith.constant 0 : i32
    %c0_i32_0 = arith.constant 0 : i32
    %c0_i32_1 = arith.constant 0 : i32
    return %c0_i32, %c0_i32_0 : i32, i32
  }
  func.func @transform_2(%arg0: i32) -> (i32, i32) {
    %c0_i32 = arith.constant 0 : i32
    %c0_i32_0 = arith.constant 0 : i32
    %c0_i32_1 = arith.constant 0 : i32
    return %c0_i32, %c0_i32_0 : i32, i32
  }
  func.func @transform_3(%arg0: i32) -> (i32, i32) {
    %c0_i32 = arith.constant 0 : i32
    %c0_i32_0 = arith.constant 0 : i32
    return %arg0, %c0_i32 : i32, i32
  }
}

</mosaic_0001>

<bundles_post_ra>
// kernel: tpu_custom_call.1
= control target key start
LH: loop header
LB: loop body
LE: loop exit
PB: predicated region body
PF: predicated region fallthrough
CT: control target
= control target key end

     0   :  { %8 = vsyncpa [#allocation3], 0  ;;  %s846_s0 = inlined_call_operand.hbm [shape: f32[8,128], index: 0, kind: input, shape index: {}]   ;;  %s847_s1 = inlined_call_operand.hbm [shape: f32[1,128], index: 1, kind: input, shape index: {}]   ;;  %s848_s2 = inlined_call_operand.hbm [shape: f32[128,128], index: 2, kind: input, shape index: {}]   ;;  %s849_s3 = inlined_call_operand.hbm [shape: f32[8,128], index: 3, kind: output, shape index: {}]  }
   0x1   :  { %9 = vsyncpa [#allocation6], 0  ;;  %s27_s14 = sshll.u32 %s847_s1, 4  ;;  %s28_s14 = int_to_ptr.hbm [resolvable:$true] %s27_s14 }
   0x2   :  { %10 = vsyncpa [#allocation4], 0  ;;  %s565_s15 = smov [#allocation5]   ;;  %s16_s19 = sshll.u32 %s846_s0, 4  ;;  %s17_s19 = int_to_ptr.hbm [resolvable:$true] %s16_s19 }
   0x3   :  { %s29_s16 = sshll.u32 %s565_s15, 4  ;;  %s566_s20 = smov [#allocation2]   ;;  %s30_s16 = int_to_ptr.vmem [resolvable:$true] %s29_s16 }
   0x4   :  { %32 = dma.hbm_to_vmem [thread:$0]  %s28_s14, 16, %s30_s16, [#allocation6]  }
   0x5   :  { %s18_s21 = sshll.u32 %s566_s20, 4  ;;  %s37_s24 = sshll.u32 %s848_s2, 4  ;;  %s19_s21 = int_to_ptr.vmem [resolvable:$true] %s18_s21  ;;  %s38_s24 = int_to_ptr.hbm [resolvable:$true] %s37_s24 }
   0x6   :  { %21 = dma.hbm_to_vmem [thread:$0]  %s17_s19, 128, %s19_s21, [#allocation3]  }
   0x7   :  { %s567_s1 = smov [#allocation7]   ;;  %s568_s26 = smov 128  }
   0x8   :  { %s39_s25 = sshll.u32 %s567_s1, 4  ;;  %s569_s27 = smov 8   ;;  %s40_s25 = int_to_ptr.vmem [resolvable:$true] %s39_s25 }
   0x9   :  { %45 = dma.hbm_to_vmem [thread:$0]  %s38_s24, 2048, %s40_s25, [#allocation6], %s568_s26, %s568_s26, %s569_s27  }
   0xa   :  { %559 = dma.done.wait [#allocation3], 128  }
   0xb   :  { %560 = vsyncadd [#allocation3], 4294967168 }
   0xc   :  { %561 = dma.done.wait [#allocation6], 2064  }
   0xd   :  { %562 = vsyncadd [#allocation6], 4294965232  ;;  %v75_v0 = vld [vmem:[#allocation7 + $0x78] sm:$0xff]  ;;  %v74_v1 = vld [vmem:[#allocation7 + $0x70] sm:$0xff]  ;;  %s570_s0 = smov [#allocation8]   ;;  %s443_s30 = sshll.u32 %s849_s3, 4  ;;  %s444_s30 = int_to_ptr.hbm [resolvable:$true] %s443_s30 }
   0xe   :  { %v73_v2 = vld [vmem:[#allocation7 + $0x68] sm:$0xff]  ;;  %v600_v3 = vand.u32 4294901760, %v75_v0  ;;  %v602_v4 = vand.u32 4294901760, %v74_v1  ;;  %v72_v6 = vld [vmem:[#allocation7 + $0x60] sm:$0xff]  ;;  %v71_v7 = vld [vmem:[#allocation7 + $0x58] sm:$0xff]  ;;  %s441_s2 = sshll.u32 %s570_s0, 4  ;;  %s442_s2 = int_to_ptr.vmem [resolvable:$true] %s441_s2 }
   0xf   :  { %v604_v5 = vand.u32 4294901760, %v73_v2  ;;  %v70_v8 = vld [vmem:[#allocation7 + $0x50] sm:$0xff]  ;;  %v606_v9 = vand.u32 4294901760, %v72_v6  ;;  %v608_v10 = vand.u32 4294901760, %v71_v7  ;;  %v69_v12 = vld [vmem:[#allocation7 + $0x48] sm:$0xff]  ;;  %v68_v13 = vld [vmem:[#allocation7 + $0x40] sm:$0xff] }
  0x10   :  { %v610_v11 = vand.u32 4294901760, %v70_v8  ;;  %77 = vmatpush.msra.mxu0 %v600_v3  ;;  %v614_v14 = vsub.f32 %v75_v0, %v600_v3  ;;  %v617_v15 = vsub.f32 %v74_v1, %v602_v4  ;;  %v622_v17 = vand.u32 4294901760, %v69_v12  ;;  %v67_v18 = vld [vmem:[#allocation7 + $0x38] sm:$0xff]  ;;  %273 = vmatpush.msra.mxu3 %v600_v3  ;;  %v66_v26 = vld [vmem:[#allocation7 + $0x30] sm:$0xff]  ;;  %v65_v36 = vld [vmem:[#allocation7 + $0x28] sm:$0xff] }
  0x11   :  { %v620_v16 = vsub.f32 %v73_v2, %v604_v5  ;;  %v626_v19 = vsub.f32 %v72_v6, %v606_v9  ;;  %v629_v20 = vsub.f32 %v71_v7, %v608_v10  ;;  %v638_v25 = vand.u32 4294901760, %v68_v13  ;;  %v64_v42 = vld [vmem:[#allocation7 + $0x20] sm:$0xff]  ;;  %v63_v47 = vld [vmem:[#allocation7 + $0x18] sm:$0xff]  ;;  %v62_v55 = vld [vmem:[#allocation7 + $0x10] sm:$0xff] }
  0x12   :  { %v632_v21 = vsub.f32 %v70_v8, %v610_v11  ;;  %79 = vmatpush.msra.mxu0 %v602_v4  ;;  %v119_v22 = vand.u32 4294901760, %v614_v14  ;;  %v125_v23 = vand.u32 4294901760, %v617_v15  ;;  %220 = vmatpush.msra.mxu2 %v614_v14  ;;  %v642_v28 = vand.u32 4294901760, %v67_v18  ;;  %v61_v60 = vld [vmem:[#allocation7 + $0x8] sm:$0xff]  ;;  %v712_v61 = vld [vmem:[#allocation2] sm:$0xff]  ;;  %v60_v2 = vld [vmem:[#allocation7] sm:$0xff] }
  0x13   :  { %v131_v24 = vand.u32 4294901760, %v620_v16  ;;  %v137_v27 = vand.u32 4294901760, %v626_v19  ;;  %v645_v29 = vsub.f32 %v69_v12, %v622_v17  ;;  %275 = vmatpush.msra.mxu3 %v602_v4  ;;  %v143_v33 = vand.u32 4294901760, %v629_v20 }
  0x14   :  { %81 = vmatpush.msra.mxu0 %v604_v5  ;;  %v120_v30 = vsub.f32 %v614_v14, %v119_v22  ;;  %v126_v31 = vsub.f32 %v617_v15, %v125_v23  ;;  %223 = vmatpush.msra.mxu2 %v617_v15  ;;  %v149_v34 = vand.u32 4294901760, %v632_v21  ;;  %v661_v35 = vand.u32 4294901760, %v66_v26 }
  0x15   :  { %v132_v32 = vsub.f32 %v620_v16, %v131_v24  ;;  %277 = vmatpush.msra.mxu3 %v604_v5  ;;  %v138_v39 = vsub.f32 %v626_v19, %v137_v27  ;;  %v669_v40 = vsub.f32 %v68_v13, %v638_v25  ;;  %v155_v41 = vand.u32 4294901760, %v645_v29 }
  0x16   :  { %v121_v37 = vand.u32 4294901760, %v120_v30  ;;  %83 = vmatpush.msra.mxu0 %v606_v9  ;;  %v127_v38 = vand.u32 4294901760, %v126_v31  ;;  %226 = vmatpush.msra.mxu2 %v620_v16  ;;  %v144_v44 = vsub.f32 %v629_v20, %v143_v33  ;;  %v678_v45 = vand.u32 4294901760, %v65_v36 }
  0x17   :  { %279 = vmatpush.msra.mxu3 %v606_v9  ;;  %v133_v43 = vand.u32 4294901760, %v132_v32  ;;  %v681_v46 = vsub.f32 %v67_v18, %v642_v28  ;;  %v161_v48 = vand.u32 4294901760, %v669_v40  ;;  %v139_v49 = vand.u32 4294901760, %v138_v39 }
  0x18   :  { %122 = vmatpush.msra.mxu1 %v121_v37  ;;  %85 = vmatpush.msra.mxu0 %v608_v10  ;;  %v150_v50 = vsub.f32 %v632_v21, %v149_v34  ;;  %v690_v51 = vand.u32 4294901760, %v64_v42  ;;  %v693_v52 = vsub.f32 %v66_v26, %v661_v35  ;;  %v156_v53 = vsub.f32 %v645_v29, %v155_v41 }
  0x19   :  { %229 = vmatpush.msra.mxu2 %v626_v19  ;;  %281 = vmatpush.msra.mxu3 %v608_v10  ;;  %v698_v54 = vand.u32 4294901760, %v63_v47  ;;  %v145_v56 = vand.u32 4294901760, %v144_v44  ;;  %v167_v57 = vand.u32 4294901760, %v681_v46  ;;  %v705_v58 = vsub.f32 %v65_v36, %v678_v45 }
  0x1a   :  { %128 = vmatpush.msra.mxu1 %v127_v38  ;;  %87 = vmatpush.msra.mxu0 %v610_v11  ;;  %v162_v59 = vsub.f32 %v669_v40, %v161_v48  ;;  %v151_v62 = vand.u32 4294901760, %v150_v50  ;;  %v173_v63 = vand.u32 4294901760, %v693_v52  ;;  %v716_v0 = vand.u32 4294901760, %v62_v55 }
  0x1b   :  { %232 = vmatpush.msra.mxu2 %v629_v20  ;;  %283 = vmatpush.msra.mxu3 %v610_v11  ;;  %v719_v1 = vsub.f32 %v64_v42, %v690_v51  ;;  %v157_v6 = vand.u32 4294901760, %v156_v53  ;;  %v722_v7 = vsub.f32 %v63_v47, %v698_v54  ;;  %v168_v8 = vsub.f32 %v681_v46, %v167_v57 }
  0x1c   :  { %134 = vmatpush.msra.mxu1 %v133_v43  ;;  %89 = vmatpush.msra.mxu0 %v622_v17  ;;  %v179_v12 = vand.u32 4294901760, %v705_v58  ;;  %v731_v13 = vand.u32 4294901760, %v61_v60  ;;  %v59_v18 = vmul.f32 %v712_v61, %v712_v61  ;;  %v163_v26 = vand.u32 4294901760, %v162_v59 }
  0x1d   :  { %235 = vmatpush.msra.mxu2 %v632_v21  ;;  %285 = vmatpush.msra.mxu3 %v622_v17  ;;  %v735_v30 = vand.u32 4294901760, %v60_v2  ;;  %v174_v31 = vsub.f32 %v693_v52, %v173_v63  ;;  %v185_v32 = vand.u32 4294901760, %v719_v1  ;;  %v745_v36 = vsub.f32 %v62_v55, %v716_v0 }
  0x1e   :  { %140 = vmatpush.msra.mxu1 %v139_v49  ;;  %91 = vmatpush.msra.mxu0 %v638_v25  ;;  %v747_v37 = vand.u32 4294901760, %v59_v18  ;;  %v191_v38 = vand.u32 4294901760, %v722_v7  ;;  %v169_v39 = vand.u32 4294901760, %v168_v8  ;;  %v180_v42 = vsub.f32 %v705_v58, %v179_v12 }
  0x1f   :  { %238 = vmatpush.msra.mxu2 %v645_v29  ;;  %287 = vmatpush.msra.mxu3 %v638_v25  ;;  %v757_v43 = vsub.f32 %v61_v60, %v731_v13  ;;  %v175_v47 = vand.u32 4294901760, %v174_v31  ;;  %v186_v49 = vsub.f32 %v719_v1, %v185_v32  ;;  %v197_v50 = vand.u32 4294901760, %v745_v36  ;;  %v460_v29 = vld [vmem:[#allocation5] ss:$0 sm:$0xff] }
  0x20   :  { %146 = vmatpush.msra.mxu1 %v145_v56  ;;  %93 = vmatpush.msra.mxu0 %v642_v28  ;;  %v109_v44 = vsub.f32 %v59_v18, %v747_v37  ;;  %v768_v53 = vsub.f32 %v60_v2, %v735_v30  ;;  %v181_v55 = vand.u32 4294901760, %v180_v42  ;;  %v192_v56 = vsub.f32 %v722_v7, %v191_v38 }
  0x21   :  { %241 = vmatpush.msra.mxu2 %v669_v40  ;;  %289 = vmatpush.msra.mxu3 %v642_v28  ;;  %v203_v59 = vand.u32 4294901760, %v757_v43  ;;  %v198_v2 = vsub.f32 %v745_v36, %v197_v50 }
  0x22   :  { %152 = vmatpush.msra.mxu1 %v151_v62  ;;  %95 = vmatpush.msra.mxu0 %v661_v35  ;;  %v110_v60 = vand.u32 4294901760, %v109_v44  ;;  %v187_v62 = vand.u32 4294901760, %v186_v49  ;;  %v193_v8 = vand.u32 4294901760, %v192_v56 }
  0x23   :  { %244 = vmatpush.msra.mxu2 %v681_v46  ;;  %291 = vmatpush.msra.mxu3 %v661_v35  ;;  %v204_v18 = vsub.f32 %v757_v43, %v203_v59  ;;  %v199_v31 = vand.u32 4294901760, %v198_v2 }
  0x24   :  { %158 = vmatpush.msra.mxu1 %v157_v6  ;;  %97 = vmatpush.msra.mxu0 %v678_v45  ;;  %v209_v6 = vand.u32 4294901760, %v768_v53 }
  0x25   :  { %247 = vmatpush.msra.mxu2 %v693_v52  ;;  %293 = vmatpush.msra.mxu3 %v678_v45  ;;  %v205_v42 = vand.u32 4294901760, %v204_v18 }
  0x26   :  { %164 = vmatpush.msra.mxu1 %v163_v26  ;;  %99 = vmatpush.msra.mxu0 %v690_v51  ;;  %v111_v26 = vsub.f32 %v109_v44, %v110_v60 }
  0x27   :  { %250 = vmatpush.msra.mxu2 %v705_v58  ;;  %295 = vmatpush.msra.mxu3 %v690_v51 }
  0x28   :  { %170 = vmatpush.msra.mxu1 %v169_v39  ;;  %101 = vmatpush.msra.mxu0 %v698_v54  ;;  %v210_v39 = vsub.f32 %v768_v53, %v209_v6 }
  0x29   :  { %253 = vmatpush.msra.mxu2 %v719_v1  ;;  %297 = vmatpush.msra.mxu3 %v698_v54 }
  0x2a   :  { %176 = vmatpush.msra.mxu1 %v175_v47  ;;  %103 = vmatpush.msra.mxu0 %v716_v0  ;;  %v112_v47 = vand.u32 4294901760, %v111_v26  ;;  %v211_v49 = vand.u32 4294901760, %v210_v39 }
  0x2b   :  { %256 = vmatpush.msra.mxu2 %v722_v7  ;;  %299 = vmatpush.msra.mxu3 %v716_v0 }
  0x2c   :  { %182 = vmatpush.msra.mxu1 %v181_v55  ;;  %105 = vmatpush.msra.mxu0 %v731_v13 }
  0x2d   :  { %259 = vmatpush.msra.mxu2 %v745_v36  ;;  %301 = vmatpush.msra.mxu3 %v731_v13 }
  0x2e   :  { %188 = vmatpush.msra.mxu1 %v187_v62  ;;  %107 = vmatpush.msra.mxu0 %v735_v30 }
  0x2f   :  { %262 = vmatpush.msra.mxu2 %v757_v43  ;;  %303 = vmatpush.msra.mxu3 %v735_v30 }
  0x30   :  { %314 = vmatpush.msrb.mxu0 %v119_v22  ;;  %194 = vmatpush.msra.mxu1 %v193_v8 }
  0x31   :  { %265 = vmatpush.msra.mxu2 %v768_v53  ;;  %307 = vmatmul.f32.vlgmr.msra.gmra.mxu3 %v110_v60 }
  0x32   :  { %318 = vmatpush.msrb.mxu0 %v125_v23  ;;  %200 = vmatpush.msra.mxu1 %v199_v31 }
  0x33   :  { %268 = vmatmul.f32.vlgmr.msra.gmra.mxu2 %v109_v44  ;;  %113 = vmatmul.f32.vlgmr.msra.gmra.mxu0 %v112_v47 }
  0x34   :  { %322 = vmatpush.msrb.mxu0 %v131_v24  ;;  %206 = vmatpush.msra.mxu1 %v205_v42 }
  0x36   :  { %326 = vmatpush.msrb.mxu0 %v137_v27  ;;  %212 = vmatpush.msra.mxu1 %v211_v49 }
  0x37   :  { %214 = vmatmul.f32.vlgmr.msra.gmra.mxu1 %v747_v37 }
  0x38   :  { %381 = vmatpush.msrb.mxu1 %v600_v3  ;;  %330 = vmatpush.msrb.mxu0 %v143_v33 }
  0x3a   :  { %383 = vmatpush.msrb.mxu1 %v602_v4  ;;  %334 = vmatpush.msrb.mxu0 %v149_v34 }
  0x3c   :  { %385 = vmatpush.msrb.mxu1 %v604_v5  ;;  %338 = vmatpush.msrb.mxu0 %v155_v41 }
  0x3e   :  { %387 = vmatpush.msrb.mxu1 %v606_v9  ;;  %342 = vmatpush.msrb.mxu0 %v161_v48 }
  0x40   :  { %389 = vmatpush.msrb.mxu1 %v608_v10  ;;  %346 = vmatpush.msrb.mxu0 %v167_v57 }
  0x42   :  { %391 = vmatpush.msrb.mxu1 %v610_v11  ;;  %350 = vmatpush.msrb.mxu0 %v173_v63 }
  0x44   :  { %393 = vmatpush.msrb.mxu1 %v622_v17  ;;  %354 = vmatpush.msrb.mxu0 %v179_v12 }
  0x46   :  { %395 = vmatpush.msrb.mxu1 %v638_v25  ;;  %358 = vmatpush.msrb.mxu0 %v185_v32 }
  0x48   :  { %397 = vmatpush.msrb.mxu1 %v642_v28  ;;  %362 = vmatpush.msrb.mxu0 %v191_v38 }
  0x4a   :  { %399 = vmatpush.msrb.mxu1 %v661_v35  ;;  %366 = vmatpush.msrb.mxu0 %v197_v50 }
  0x4c   :  { %401 = vmatpush.msrb.mxu1 %v678_v45  ;;  %370 = vmatpush.msrb.mxu0 %v203_v59 }
  0x4e   :  { %403 = vmatpush.msrb.mxu1 %v690_v51  ;;  %374 = vmatpush.msrb.mxu0 %v209_v6 }
  0x4f   :  { %376 = vmatmul.f32.vlgmr.msrb.gmra.mxu0 %v747_v37 }
  0x50   :  { %405 = vmatpush.msrb.mxu1 %v698_v54 }
  0x52   :  { %407 = vmatpush.msrb.mxu1 %v716_v0 }
  0x54   :  { %409 = vmatpush.msrb.mxu1 %v731_v13 }
  0x56   :  { %411 = vmatpush.msrb.mxu1 %v735_v30 }
  0x57   :  { %413 = vmatmul.f32.vlgmr.msrb.gmra.mxu1 %v747_v37 }
  0xb0   :  { %v114_v4 = vpop.f32.mrf.mxu0 }
  0xb4   :  { %v215_v3 = vpop.f32.mrf.mxu1  ;;  %v308_v11 = vpop.f32.mrf.mxu3 }
  0xb5   :  { %v216_v5 = vadd.f32 %v215_v3, %v114_v4 }
  0xb6   :  { %v269_v9 = vpop.f32.mrf.mxu2 }
  0xb7   :  { %v270_v10 = vadd.f32 %v269_v9, %v216_v5 }
  0xb9   :  { %v309_v14 = vadd.f32 %v308_v11, %v270_v10 }
  0xcc   :  { %v377_v15 = vpop.f32.mrf.mxu0 }
  0xcd   :  { %v378_v16 = vadd.f32 %v377_v15, %v309_v14 }
  0xd4   :  { %v414_v17 = vpop.f32.mrf.mxu1 }
  0xd5   :  { %v415_v19 = vadd.f32 %v414_v17, %v378_v16 }
  0xd7   :  { %v417_v20 = vmul.f32 0.03125, %v415_v19 }
  0xd9   :  { %v418_v21 = vadd.f32 1e-05, %v417_v20 }
  0xdb   :  { %461 = vrsqrt.f32 %v418_v21  ;;  %vm425_vm1 = vweird.f32 %v418_v21 }
  0xe1   :  { %v462_v22 = vpop.eup %461 }
  0xe2   :  { %v420_v23 = vmul.f32 %v462_v22, %v418_v21  ;;  %vm426_vm0 = vweird.f32 %v462_v22 }
  0xe3   :  { %vm427_vm2 = vmor %vm425_vm1, %vm426_vm0 }
  0xe4   :  { %v421_v24 = vmul.f32 %v462_v22, %v420_v23 }
  0xe6   :  { %v422_v25 = vmul.f32 0.5, %v421_v24 }
  0xe8   :  { %v423_v27 = vsub.f32 1.5, %v422_v25 }
  0xea   :  { %v424_v28 = vmul.f32 %v462_v22, %v423_v27 }
  0xec   :  { %v428_v33 = vsel %vm427_vm2, %v462_v22, %v424_v28 }
  0xed   :  { %v430_v34 = vmul.f32 %v428_v33, %v712_v61 }
  0xef   :  { %v434_v35 = vmul.f32 %v460_v29, %v430_v34 }
  0xf1   :  { %435 = vst [vmem:[#allocation8] sm:$0xff] %v434_v35 }
  0xf2   :  { %446 = dma.vmem_to_hbm [thread:$0]  %s442_s2, 128, %s444_s30, [#allocation4]  }
  0xf3   :  { %563 = dma.done.wait [#allocation4], 128  }
  0xf4   :  { %564 = vsyncadd [#allocation4], 4294967168 }
  0xf5   :  { %451 = vsyncpa [#allocation3], 1 }
  0xf6   :  { %452 = vsyncpa [#allocation6], 1 }
  0xf7   :  { %453 = vsyncpa [#allocation4], 1 }

</bundles_post_ra>
